<compile_context>
chip_gen: v7x
topology: tpu7x:2x2x1
jax: 0.10.0
libtpu: 0.0.40
codegen_flags: <defaults>
</compile_context>

<pallas_src>
import functools

import numpy as np
import jax
import jax.numpy as jnp
from jax import lax
from jax.experimental import pallas as pl
from jax.experimental.pallas import tpu as pltpu


# ----------------------------------------------------------------------------
# Pallas kernels
# ----------------------------------------------------------------------------
def _spectral_conv_kernel(x_ref, sw_ref, alpha_ref, beta_ref, mask_ref,
                          out_ref, score_ref, *, n_poly, dim, center):
    """One batch element, feature-major (F, N): polynomial-in-Laplacian conv."""
    N = x_ref.shape[-1]
    F_in = x_ref.shape[1]
    z = x_ref[0]                                   # (F_in, N)
    if center:                                     # fused prepare_input centering
        z = z - jnp.mean(z, axis=1, keepdims=True)

    w_e = sw_ref[0:1, :]                           # edge weights of W = D^-1/2 A D^-1/2
    w_w = sw_ref[1:2, :]
    w_s = sw_ref[2:3, :]
    w_n = sw_ref[3:4, :]

    def adj_apply(v):                              # v -> W v via 5-point stencil (XLU+VPU)
        return (w_e * pltpu.roll(v, N - 1, axis=1)      # east  neighbour z[i+1]
                + w_w * pltpu.roll(v, 1, axis=1)        # west  neighbour z[i-1]
                + w_s * pltpu.roll(v, N - dim, axis=1)  # south neighbour z[i+dim]
                + w_n * pltpu.roll(v, dim, axis=1))     # north neighbour z[i-dim]

    def apply_alpha(k, zk):
        if F_in == 1:
            # (F_out,1) * (1,N): VPU broadcast-FMA, skip the degenerate MXU dot.
            return alpha_ref[:, k:k + 1] * zk
        return jnp.dot(alpha_ref[:, k * F_in:(k + 1) * F_in], zk,
                       preferred_element_type=jnp.float32)

    # Per-power accumulation keeps only z + accumulator live (no power stack).
    y = apply_alpha(0, z) + beta_ref[...]          # (F_out, N); beta broadcasts over N
    for k in range(1, n_poly):
        z = z - adj_apply(z)                       # L^k x  (L z = z - W z)
        y = y + apply_alpha(k, z)

    mask_row = mask_ref[0]                         # (1, N)
    out = jnp.maximum(y, 0.0) * mask_row
    out_ref[0] = out.astype(out_ref.dtype)

    # Dynamic-pool score fused here (saves an XLA reduce + HBM round trip);
    # inactive nodes forced very negative so top-k never re-activates them.
    score = jnp.max(out, axis=0, keepdims=True)    # (1, N), sublane reduce
    score_ref[0] = jnp.where(mask_row > 0.0, score,
                             jnp.float32(-1e30)).astype(score_ref.dtype)


def _stat_fc_kernel(y_ref, mask_ref, sw_ref,
                    w1_ref, b1_ref, w2_ref, b2_ref, w3_ref, b3_ref,
                    w4_ref, b4_ref, out_ref, stat_ref, *, n_poly, dim):
    """One batch element: statistics of (L-I)^p (y*mask) fused with the MLP."""
    N = y_ref.shape[-1]
    F = y_ref.shape[1]
    nf = n_poly * F                                # 240 features per stat kind
    mask_row = mask_ref[0]                         # (1, N)
    z = y_ref[0] * mask_row                        # (F, N)

    w_e = sw_ref[0:1, :]
    w_w = sw_ref[1:2, :]
    w_s = sw_ref[2:3, :]
    w_n = sw_ref[3:4, :]

    def adj_apply(v):
        return (w_e * pltpu.roll(v, N - 1, axis=1)
                + w_w * pltpu.roll(v, 1, axis=1)
                + w_s * pltpu.roll(v, N - dim, axis=1)
                + w_n * pltpu.roll(v, dim, axis=1))

    # TODO(synk): reference Statistic source unavailable; mean = (sum over all
    # nodes) / (number of ACTIVE nodes), max over all nodes.
    ones_col = jnp.ones((N, 1), jnp.float32)
    inv_act = 1.0 / jnp.sum(mask_row, axis=1, keepdims=True)   # (1, 1)

    for p in range(n_poly):
        if p > 0:
            z = -adj_apply(z)                      # (L - I)^p (y * mask) = -W z
        # Sum/mean on the MXU (keeps the saturated XLU for rolls + max only).
        mean_col = jnp.dot(z, ones_col,
                           preferred_element_type=jnp.float32) * inv_act  # (F, 1)
        max_col = jnp.max(z, axis=1, keepdims=True)                        # (F, 1)
        stat_ref[p * F:(p + 1) * F, :] = mean_col
        stat_ref[nf + p * F:nf + (p + 1) * F, :] = max_col

    # Move the (2*nf, 1) stat column into a lane-dense row with one tiny MXU
    # contraction (all 128 lanes hold the same value after the lane splat).
    stat_col = stat_ref[...]                                       # (2*nf, 1)
    stat_rep = jnp.broadcast_to(stat_col, (2 * nf, 128))
    lane_idx = lax.broadcasted_iota(jnp.int32, (8, 128), 1)
    pick = (lane_idx == 0).astype(jnp.float32)                     # one-hot lane 0
    # Rows are replicated (M=8) so every matmul below has tile-native shapes.
    feat = lax.dot_general(pick, stat_rep, (((1,), (1,)), ((), ())),
                           preferred_element_type=jnp.float32)     # (8, 2*nf)

    # Row-oriented MLP: weights pre-transposed to (in, out) and zero-padded
    # host-side (exact); activations stay lane-dense rows.
    h = jnp.maximum(jnp.dot(feat, w1_ref[...],
                            preferred_element_type=jnp.float32) + b1_ref[...], 0.0)
    h = jnp.maximum(jnp.dot(h, w2_ref[...],
                            preferred_element_type=jnp.float32) + b2_ref[...], 0.0)
    h = jnp.maximum(jnp.dot(h, w3_ref[...],
                            preferred_element_type=jnp.float32) + b3_ref[...], 0.0)
    logits = jnp.dot(h, w4_ref[...],
                     preferred_element_type=jnp.float32) + b4_ref[...]   # (8, 128)
    out_ref[0] = logits[0:1, :].astype(out_ref.dtype)              # lane-dense store


def _roll_probe_kernel(x_ref, o_ref):
    o_ref[...] = pltpu.roll(x_ref[...], 1, axis=1)


# ----------------------------------------------------------------------------
# Pallas wrappers
# ----------------------------------------------------------------------------
def spectral_conv(x, sw, alpha_s, beta_c, mask, *, center):
    # x: (B, F_in, N), sw: (4, N), alpha_s: (F_out, K*F_in), beta_c: (F_out, 1),
    # mask: (B, 1, N) -> (out (B, F_out, N), score (B, 1, N))
    B, F_in, N = x.shape
    F_out, kf = alpha_s.shape
    n_poly = kf // F_in
    dim = int(round(N ** 0.5))
    kernel = functools.partial(_spectral_conv_kernel,
                               n_poly=n_poly, dim=dim, center=center)
    return pl.pallas_call(
        kernel,
        out_shape=(jax.ShapeDtypeStruct((B, F_out, N), jnp.float32),
                   jax.ShapeDtypeStruct((B, 1, N), jnp.float32)),
        grid=(B,),
        in_specs=[
            pl.BlockSpec((1, F_in, N), lambda b: (b, 0, 0)),
            pl.BlockSpec((4, N), lambda b: (0, 0)),
            pl.BlockSpec((F_out, kf), lambda b: (0, 0)),
            pl.BlockSpec((F_out, 1), lambda b: (0, 0)),
            pl.BlockSpec((1, 1, N), lambda b: (b, 0, 0)),
        ],
        out_specs=(pl.BlockSpec((1, F_out, N), lambda b: (b, 0, 0)),
                   pl.BlockSpec((1, 1, N), lambda b: (b, 0, 0))),
        compiler_params=pltpu.CompilerParams(
            dimension_semantics=("parallel",)),
    )(x, sw, alpha_s, beta_c, mask)


def statistic_fc(y, mask, sw, fc_params, n_poly=12):
    # y: (B, F, N), mask: (B, 1, N) -> logits (B, 1, 128) (first 8 lanes valid)
    B, F, N = y.shape
    dim = int(round(N ** 0.5))
    (w1, b1), (w2, b2), (w3, b3), (w4, b4) = fc_params
    out_lanes = w4.shape[1]
    kernel = functools.partial(_stat_fc_kernel, n_poly=n_poly, dim=dim)
    full2 = lambda a: pl.BlockSpec(a.shape, lambda b: (0, 0))
    return pl.pallas_call(
        kernel,
        out_shape=jax.ShapeDtypeStruct((B, 1, out_lanes), jnp.float32),
        grid=(B,),
        in_specs=[
            pl.BlockSpec((1, F, N), lambda b: (b, 0, 0)),
            pl.BlockSpec((1, 1, N), lambda b: (b, 0, 0)),
            pl.BlockSpec((4, N), lambda b: (0, 0)),
            full2(w1), full2(b1), full2(w2), full2(b2),
            full2(w3), full2(b3), full2(w4), full2(b4),
        ],
        out_specs=pl.BlockSpec((1, 1, out_lanes), lambda b: (b, 0, 0)),
        scratch_shapes=[pltpu.VMEM((2 * n_poly * F, 1), jnp.float32)],
        compiler_params=pltpu.CompilerParams(
            dimension_semantics=("parallel",)),
    )(y, mask, sw, w1, b1, w2, b2, w3, b3, w4, b4)


def pltpu_roll_matches_jnp():
    """Probe the hardware rotation direction so the stencil is direction-proof."""
    x = jnp.tile(jnp.arange(128, dtype=jnp.float32)[None, :], (8, 1))
    y = pl.pallas_call(
        _roll_probe_kernel,
        out_shape=jax.ShapeDtypeStruct((8, 128), jnp.float32),
    )(x)
    return bool(y[0, 0] == 127.0)       # jnp.roll convention: result[0] == x[-1]


# ----------------------------------------------------------------------------
# Plain-JAX glue (pooling / forward orchestration)
# ----------------------------------------------------------------------------
def dynamic_pool_mask(score, num_active_nodes):
    # score: (B, 1, N), inactive nodes already at -1e30 -> top-k stays inside
    # the currently active set.
    # TODO(synk): top-k node selection has no clean Pallas equivalent; done in JAX.
    B, _, N = score.shape
    _, idx = jax.lax.top_k(score[:, 0, :], num_active_nodes)     # (B, k)
    new_mask = jnp.zeros((B, N), jnp.float32)
    new_mask = new_mask.at[jnp.arange(B)[:, None], idx].set(1.0)
    return new_mask[:, None, :]                                  # (B, 1, N)


@functools.partial(jax.jit, static_argnums=(2, 3))
def tigranet_eth80_forward(x, prepared, num_active_nodes1, num_active_nodes2):
    sw = prepared["stencil"]
    N = sw.shape[1]
    B = x.shape[0]
    xp = x.reshape(B, 1, N).astype(jnp.float32)    # centering fused into conv1
    mask0 = jnp.ones((B, 1, N), jnp.float32)

    sc1, score1 = spectral_conv(xp, sw, prepared["alpha1"], prepared["beta1"],
                                mask0, center=True)
    mask1 = dynamic_pool_mask(score1, num_active_nodes1)
    sc2, score2 = spectral_conv(sc1, sw, prepared["alpha2"], prepared["beta2"],
                                mask1, center=False)
    mask2 = dynamic_pool_mask(score2, num_active_nodes2)

    logits = statistic_fc(sc2, mask2, sw, prepared["fc"], n_poly=12)  # (B,1,128)
    return logits[:, 0, :8]                                           # (B, 8)


# ----------------------------------------------------------------------------
# Deterministic setup
# ----------------------------------------------------------------------------
def grid_laplacian(dim):
    """Dense normalized Laplacian of a 4-connected dim x dim grid graph."""
    N = dim * dim
    A = np.zeros((N, N), np.float32)
    for r in range(dim):
        for c in range(dim):
            i = r * dim + c
            if c + 1 < dim:
                A[i, i + 1] = A[i + 1, i] = 1.0
            if r + 1 < dim:
                A[i, i + dim] = A[i + dim, i] = 1.0
    deg = A.sum(1)
    dinv = 1.0 / np.sqrt(np.maximum(deg, 1e-12))
    W = dinv[:, None] * A * dinv[None, :]
    Lap = np.eye(N, dtype=np.float32) - W
    Lap_shifted = Lap - np.eye(N, dtype=np.float32)
    return Lap, Lap_shifted


def stencil_weights(Lap, dim, roll_like_jnp=True):
    """Per-direction edge weights of W = I - L so that in-kernel
       (W z)[i] = sw[0,i]*roll(z,N-1)[i] + sw[1,i]*roll(z,1)[i]
                + sw[2,i]*roll(z,N-dim)[i] + sw[3,i]*roll(z,dim)[i]."""
    N = dim * dim
    W = np.eye(N, dtype=np.float32) - Lap
    idx = np.arange(N)
    r, c = idx // dim, idx % dim
    east = np.zeros(N, np.float32)
    west = np.zeros(N, np.float32)
    south = np.zeros(N, np.float32)
    north = np.zeros(N, np.float32)
    m = c < dim - 1
    east[m] = W[idx[m], idx[m] + 1]
    m = c > 0
    west[m] = W[idx[m], idx[m] - 1]
    m = r < dim - 1
    south[m] = W[idx[m], idx[m] + dim]
    m = r > 0
    north[m] = W[idx[m], idx[m] - dim]
    # Wrap-around safety: the roll-based stencil is only valid if weights of
    # non-existent (wrapping) neighbours are exactly zero.
    assert np.all(east[c == dim - 1] == 0.0)
    assert np.all(west[c == 0] == 0.0)
    assert np.all(south[r == dim - 1] == 0.0)
    assert np.all(north[r == 0] == 0.0)
    if roll_like_jnp:
        return np.stack([east, west, south, north], axis=0)
    # Opposite rotation direction: roll(z, N-1)[i] = z[i-1], etc.
    return np.stack([west, east, north, south], axis=0)


def init_params(key):
    ks = jax.random.split(key, 12)

    def linear(kw, kb, fan_in, fan_out):
        # Matches torch.nn.Linear default init; weight stored (out, in).
        bound = 1.0 / np.sqrt(fan_in)
        w = jax.random.uniform(kw, (fan_out, fan_in), jnp.float32, -bound, bound)
        b = jax.random.uniform(kb, (fan_out, 1), jnp.float32, -bound, bound)
        return w, b

    return {
        # SpectralConv1: F_in=1, F_out=10, degree 5 -> 6 polynomial terms.
        "alpha1": 0.1 * jax.random.normal(ks[0], (6, 1, 10), jnp.float32),
        "beta1": 0.1 * jax.random.normal(ks[1], (10, 1), jnp.float32),
        # SpectralConv2: F_in=10, F_out=20, degree 5.
        "alpha2": 0.1 * jax.random.normal(ks[2], (6, 10, 20), jnp.float32),
        "beta2": 0.1 * jax.random.normal(ks[3], (20, 1), jnp.float32),
        # Fully connected: 480 -> 500 -> 300 -> 100 -> 8.
        "fc": (
            linear(ks[4], ks[5], 480, 500),
            linear(ks[6], ks[7], 500, 300),
            linear(ks[8], ks[9], 300, 100),
            linear(ks[10], ks[11], 100, 8),
        ),
    }


def prepare_params(params, sw):
    """One-time re-layout: stack alphas for the per-power apply, transpose the
    MLP weights to (in, out) row orientation and zero-pad to MXU-friendly
    shapes (exact, not approximate).  W1's 480 input columns are interpreted as
    [mean(p=0..11, f=0..19), max(p=0..11, f=0..19)] with index p*20+f per half,
    matching the feature order produced inside _stat_fc_kernel."""
    def stack_alpha(a):                    # (K, F_in, F_out) -> (F_out, K*F_in)
        K, F_in, F_out = a.shape
        return jnp.transpose(a, (2, 0, 1)).reshape(F_out, K * F_in)

    def pad_row_oriented(wb, in_pad, out_pad):
        w, b = wb                          # w: (out, in), b: (out, 1)
        wt = jnp.transpose(w)              # (in, out)
        wt = jnp.pad(wt, ((0, in_pad - wt.shape[0]), (0, out_pad - wt.shape[1])))
        br = jnp.pad(jnp.transpose(b), ((0, 0), (0, out_pad - b.shape[0])))
        return wt, br                      # (in_pad, out_pad), (1, out_pad)

    fc1, fc2, fc3, fc4 = params["fc"]
    return {
        "stencil": jnp.asarray(sw),
        "alpha1": stack_alpha(params["alpha1"]),
        "beta1": params["beta1"],
        "alpha2": stack_alpha(params["alpha2"]),
        "beta2": params["beta2"],
        "fc": (
            pad_row_oriented(fc1, 480, 512),
            pad_row_oriented(fc2, 512, 384),
            pad_row_oriented(fc3, 384, 128),
            pad_row_oriented(fc4, 128, 128),
        ),
    }


if __name__ == "__main__":
    # Configuration matching the module: dim=32 -> num_nodes=1024 keeps the
    # hard-coded 600/300 active-node pool sizes valid.
    dim = 32
    batch_size = 2
    num_nodes = dim * dim

    Lap, Lap_shifted = grid_laplacian(dim)

    # Host-side self-check of the stencil formula under np.roll semantics.
    sw_np = stencil_weights(Lap, dim, roll_like_jnp=True)
    v = np.random.RandomState(0).randn(num_nodes).astype(np.float32)
    Wv = (sw_np[0] * np.roll(v, num_nodes - 1) + sw_np[1] * np.roll(v, 1)
          + sw_np[2] * np.roll(v, num_nodes - dim) + sw_np[3] * np.roll(v, dim))
    assert np.allclose(Lap @ v, v - Wv, atol=1e-4)
    assert np.allclose(Lap_shifted @ v, -Wv, atol=1e-4)

    # Pin the device rotation direction (pltpu.roll is documented to match
    # jnp.roll; the probe makes the stencil direction-proof regardless).
    sw = sw_np if pltpu_roll_matches_jnp() else stencil_weights(
        Lap, dim, roll_like_jnp=False)

    key = jax.random.PRNGKey(0)
    k_params, k_input = jax.random.split(key)
    params = init_params(k_params)
    prepared = prepare_params(params, sw)
    x = jax.random.normal(k_input, (batch_size, dim, dim), jnp.float32)

    out = tigranet_eth80_forward(x, prepared, 600, 300)
    out = jax.block_until_ready(out)
    assert out.shape == (batch_size, 8), out.shape
    assert bool(jnp.all(jnp.isfinite(out)))
    print("KERNEL_OK")
</pallas_src>

<mosaic_0001>
module attributes {stable_mosaic.version = 11 : i64} {
  func.func @_roll_probe_kernel(%arg0: memref<8x128xf32, #tpu.memory_space<vmem>>, %arg1: memref<8x128xf32, #tpu.memory_space<vmem>>) attributes {dimension_semantics = [], scalar_prefetch = 0 : i64, scratch_operands = 0 : i64, tpu.core_type = #tpu.core_type<tc>} {
    %c0 = arith.constant 0 : index
    %c0_0 = arith.constant 0 : index
    %0 = vector.load %arg0[%c0, %c0_0] : memref<8x128xf32, #tpu.memory_space<vmem>>, vector<8x128xf32>
    %c1_i32 = arith.constant 1 : i32
    %1 = tpu.dynamic_rotate %0 by %c1_i32 dim 1 : vector<8x128xf32>, i32 -> vector<8x128xf32>
    %c0_1 = arith.constant 0 : index
    %c0_2 = arith.constant 0 : index
    %2 = vector.load %arg1[%c0_1, %c0_2] : memref<8x128xf32, #tpu.memory_space<vmem>>, vector<8x128xf32>
    tpu.vector_store %arg1[%c0_1, %c0_2], %1 {strides = array<i32>} : memref<8x128xf32, #tpu.memory_space<vmem>>, vector<8x128xf32>,
    return
  }
}

</mosaic_0001>

<bundles_post_ra>
// kernel: tpu_custom_call.1
= control target key start
LH: loop header
LB: loop body
LE: loop exit
PB: predicated region body
PF: predicated region fallthrough
CT: control target
= control target key end

     0   :  { %6 = vsyncpa [#allocation3], 0  ;;  %s128_s0 = inlined_call_operand.hbm [shape: f32[8,128], index: 0, kind: input, shape index: {}]   ;;  %s129_s1 = inlined_call_operand.hbm [shape: f32[8,128], index: 1, kind: output, shape index: {}]  }
   0x1   :  { %7 = vsyncpa [#allocation4], 0  ;;  %s91_s6 = smov [#allocation2]   ;;  %s43_s10 = scalar_lea.hbm %s128_s0, 128 }
   0x2   :  { %s14_s7 = sshll.u32 %s91_s6, 4  ;;  %p44_p0 = scmp.ne.s32.totalorder %s128_s0, %s43_s10  ;;  %s15_s7 = int_to_ptr.vmem [resolvable:$true] %s14_s7 }
   0x3   :  { %p47_p1 = scmp.lt.u32.totalorder %s43_s10, %s128_s0 }
   0x5   :  { %p49_p2 = pnand %p47_p1, %p44_p0 }
   0x7   :  { %52 = shalt.err (!%p49_p2)
}
   0x8   :  { %s53_s15 = scalar_lea.vmem %s15_s7, 128  ;;  %p58_p4 = scmp.lt.s32.totalorder %s15_s7, %s15_s7 }
   0x9   :  { %p54_p3 = scmp.ne.s32.totalorder %s15_s7, %s53_s15  ;;  %p59_p5 = scmp.lt.s32.totalorder %s53_s15, %s53_s15 }
   0xb   :  { %p60_p6 = por %p59_p5, %p58_p4 }
   0xd   :  { %p61_p7 = pnand %p60_p6, %p54_p3 }
   0xf   :  { %64 = shalt.err (!%p61_p7)
}
  0x10   :  { %17 = dma.hbm_to_vmem [thread:$0]  %s128_s0, 128, %s15_s7, [#allocation3]  }
  0x11   :  { %87 = dma.done.wait [#allocation3], 128  }
  0x12   :  { %88 = vsyncadd [#allocation3], 4294967168  ;;  %v21_v0 = vld [vmem:[#allocation2] sm:$0xff]  ;;  %s92_s18 = smov 1   ;;  %s93_s19 = smov [#allocation5]  }
  0x13   :  { %22 = vrot.lane.b32.xlu0 %v21_v0, %s92_s18  ;;  %s31_s20 = sshll.u32 %s93_s19, 4  ;;  %s32_s20 = int_to_ptr.vmem [resolvable:$true] %s31_s20 }
  0x14   :  { %s65_s21 = scalar_lea.vmem %s32_s20, 128  ;;  %p70_p9 = scmp.lt.s32.totalorder %s32_s20, %s32_s20 }
  0x15   :  { %p66_p8 = scmp.ne.s32.totalorder %s32_s20, %s65_s21  ;;  %p71_p10 = scmp.lt.s32.totalorder %s65_s21, %s65_s21 }
  0x17   :  { %p72_p11 = por %p71_p10, %p70_p9 }
  0x19   :  { %p73_p12 = pnand %p72_p11, %p66_p8 }
  0x85   :  { %v23_v1 = vpop.permute.xlu0 %22 }
  0x86   :  { %24 = vst [vmem:[#allocation5] sm:$0xff] %v23_v1 }
  0x87   :  { %76 = shalt.err (!%p73_p12)
}
  0x88   :  { %s77_s0 = scalar_lea.hbm %s129_s1, 128 }
  0x89   :  { %p78_p13 = scmp.ne.s32.totalorder %s129_s1, %s77_s0  ;;  %p81_p0 = scmp.lt.u32.totalorder %s77_s0, %s129_s1 }
  0x8b   :  { %p83_p1 = pnand %p81_p0, %p78_p13 }
  0x8d   :  { %86 = shalt.err (!%p83_p1)
}
  0x8e   :  { %34 = dma.vmem_to_hbm [thread:$0]  %s32_s20, 128, %s129_s1, [#allocation4]  }
  0x8f   :  { %89 = dma.done.wait [#allocation4], 128  }
  0x90   :  { %90 = vsyncadd [#allocation4], 4294967168 }
  0x91   :  { %38 = vsyncpa [#allocation3], 1 }
  0x92   :  { %39 = vsyncpa [#allocation4], 1 }

</bundles_post_ra>
